<compile_context>
chip_gen: v7x
topology: tpu7x:2x2x1
jax: 0.10.0
libtpu: 0.0.40
codegen_flags: <defaults>
</compile_context>

<pallas_src>
import functools

import jax
import jax.numpy as jnp
from jax.experimental import pallas as pl
from jax.experimental.pallas import tpu as pltpu

OUT_PAD = 128  # pad the size-1 output feature dim to a full lane width


def mlp_kernel(x_ref, w1_ref, b1_ref, w2_ref, b2_ref, w3_ref, b3_ref, o_ref):
    """Whole MLP hot path fused: 3 matmuls + biases + sigmoid, f32 accumulation."""
    x = x_ref[...]
    # linear1: [B, D_in] @ [D_in, D1] + [1, D1]
    h1 = jnp.dot(x, w1_ref[...], preferred_element_type=jnp.float32) + b1_ref[...]
    # linear2: [B, D1] @ [D1, D2] + [1, D2]
    h2 = jnp.dot(h1, w2_ref[...], preferred_element_type=jnp.float32) + b2_ref[...]
    # linear3 (output pre-padded to lane width for a dense, unmasked store)
    h3 = jnp.dot(h2, w3_ref[...], preferred_element_type=jnp.float32) + b3_ref[...]
    o_ref[...] = jax.nn.sigmoid(h3).astype(o_ref.dtype)


def prepare_params(w1, b1, w2, b2, w3, b3):
    """One-time parameter prep (NOT in the per-call path).

    Weights are already stored transposed ([in, out]); biases become [1, out];
    the final layer is zero-padded to 128 output columns (zeros only affect
    columns that are sliced off before returning).
    """
    w3_p = jnp.zeros((w3.shape[0], OUT_PAD), w3.dtype).at[:, :1].set(w3)
    b3_p = jnp.zeros((1, OUT_PAD), b3.dtype).at[:, :1].set(b3.reshape(1, 1))
    return (w1, b1.reshape(1, -1), w2, b2.reshape(1, -1), w3_p, b3_p)


@functools.partial(jax.jit, static_argnames=("tile_b",))
def mlp_forward(x, params, tile_b=256):
    """x: [B, dim_input]; params from prepare_params(). Returns [B, 1]."""
    w1, b1, w2, b2, w3_p, b3_p = params
    B, d_in = x.shape

    if B % tile_b == 0 and B // tile_b >= 2:
        # ---- batch-tiled path: pipelined x/out DMAs, weights stay resident ----
        grid = (B // tile_b,)
        out_padded = pl.pallas_call(
            mlp_kernel,
            out_shape=jax.ShapeDtypeStruct((B, OUT_PAD), x.dtype),
            grid=grid,
            in_specs=[
                pl.BlockSpec((tile_b, d_in), lambda i: (i, 0)),
                pl.BlockSpec(w1.shape, lambda i: (0, 0)),
                pl.BlockSpec(b1.shape, lambda i: (0, 0)),
                pl.BlockSpec(w2.shape, lambda i: (0, 0)),
                pl.BlockSpec(b2.shape, lambda i: (0, 0)),
                pl.BlockSpec(w3_p.shape, lambda i: (0, 0)),
                pl.BlockSpec(b3_p.shape, lambda i: (0, 0)),
            ],
            out_specs=pl.BlockSpec((tile_b, OUT_PAD), lambda i: (i, 0)),
            compiler_params=pltpu.CompilerParams(
                dimension_semantics=("parallel",),  # v7x: shard across 2 TCs
            ),
        )(x, w1, b1, w2, b2, w3_p, b3_p)
    else:
        # ---- latency path: no grid, everything in VMEM, single kernel body ----
        out_padded = pl.pallas_call(
            mlp_kernel,
            out_shape=jax.ShapeDtypeStruct((B, OUT_PAD), x.dtype),
            in_specs=[pl.BlockSpec(memory_space=pltpu.MemorySpace.VMEM)] * 7,
            out_specs=pl.BlockSpec(memory_space=pltpu.MemorySpace.VMEM),
        )(x, w1, b1, w2, b2, w3_p, b3_p)

    # Glue: slice back the real size-1 output column.
    return out_padded[:, :1]


def init_linear(key, fan_in, fan_out, dtype=jnp.float32):
    """Deterministic init mirroring PyTorch nn.Linear default U[-1/sqrt(fan_in), +...]."""
    kw, kb = jax.random.split(key)
    bound = 1.0 / jnp.sqrt(jnp.array(fan_in, dtype))
    # stored already transposed: [in, out]
    w = jax.random.uniform(kw, (fan_in, fan_out), dtype, -bound, bound)
    b = jax.random.uniform(kb, (fan_out,), dtype, -bound, bound)
    return w, b


if __name__ == "__main__":
    # Small shapes consistent with the module: batch=8, dim_input=32, dim_l1=64, dim_l2=32.
    B, DIM_IN, DIM_L1, DIM_L2 = 8, 32, 64, 32

    key = jax.random.PRNGKey(0)
    kx, k1, k2, k3, kx2 = jax.random.split(key, 5)

    x = jax.random.normal(kx, (B, DIM_IN), jnp.float32)
    w1, b1 = init_linear(k1, DIM_IN, DIM_L1)
    w2, b2 = init_linear(k2, DIM_L1, DIM_L2)
    w3, b3 = init_linear(k3, DIM_L2, 1)

    params = prepare_params(w1, b1, w2, b2, w3, b3)

    def ref_fn(xx):
        return jax.nn.sigmoid(((xx @ w1 + b1) @ w2 + b2) @ w3 + b3)

    # 1) latency path (no grid), B=8
    out = jax.block_until_ready(mlp_forward(x, params))
    assert out.shape == (B, 1), out.shape
    assert jnp.allclose(out, ref_fn(x), atol=1e-5, rtol=1e-5)

    # 2) batch-tiled path (grid over batch, weights VMEM-resident), B=512
    B2 = 512
    x2 = jax.random.normal(kx2, (B2, DIM_IN), jnp.float32)
    out2 = jax.block_until_ready(mlp_forward(x2, params))
    assert out2.shape == (B2, 1), out2.shape
    assert jnp.allclose(out2, ref_fn(x2), atol=1e-5, rtol=1e-5)

    print("KERNEL_OK")
</pallas_src>

<mosaic_0001>
module attributes {stable_mosaic.version = 11 : i64} {
  func.func @mlp_kernel(%arg0: memref<8x32xf32, #tpu.memory_space<vmem>>, %arg1: memref<32x64xf32, #tpu.memory_space<vmem>>, %arg2: memref<1x64xf32, #tpu.memory_space<vmem>>, %arg3: memref<64x32xf32, #tpu.memory_space<vmem>>, %arg4: memref<1x32xf32, #tpu.memory_space<vmem>>, %arg5: memref<32x128xf32, #tpu.memory_space<vmem>>, %arg6: memref<1x128xf32, #tpu.memory_space<vmem>>, %arg7: memref<8x128xf32, #tpu.memory_space<vmem>>) attributes {dimension_semantics = [], scalar_prefetch = 0 : i64, scratch_operands = 0 : i64, tpu.core_type = #tpu.core_type<tc>} {
    %c0 = arith.constant 0 : index
    %c0_0 = arith.constant 0 : index
    %0 = vector.load %arg0[%c0, %c0_0] : memref<8x32xf32, #tpu.memory_space<vmem>>, vector<8x32xf32>
    %c0_1 = arith.constant 0 : index
    %c0_2 = arith.constant 0 : index
    %1 = vector.load %arg1[%c0_1, %c0_2] : memref<32x64xf32, #tpu.memory_space<vmem>>, vector<32x64xf32>
    %cst = arith.constant dense<0.000000e+00> : vector<8x64xf32>
    %2 = tpu.matmul %0, %1, %cst {dimension_numbers = #tpu.dot_dimension_numbers<[1], [0], [0], [1], [0, 0, 1, 1], [], []>} : vector<8x32xf32>, vector<32x64xf32>, vector<8x64xf32> -> vector<8x64xf32>
    %c0_3 = arith.constant 0 : index
    %c0_4 = arith.constant 0 : index
    %3 = vector.load %arg2[%c0_3, %c0_4] : memref<1x64xf32, #tpu.memory_space<vmem>>, vector<1x64xf32>
    %4 = vector.broadcast %3 : vector<1x64xf32> to vector<8x64xf32>
    %5 = arith.addf %2, %4 : vector<8x64xf32>
    %c0_5 = arith.constant 0 : index
    %c0_6 = arith.constant 0 : index
    %6 = vector.load %arg3[%c0_5, %c0_6] : memref<64x32xf32, #tpu.memory_space<vmem>>, vector<64x32xf32>
    %cst_7 = arith.constant dense<0.000000e+00> : vector<8x32xf32>
    %7 = tpu.matmul %5, %6, %cst_7 {dimension_numbers = #tpu.dot_dimension_numbers<[1], [0], [0], [1], [0, 0, 1, 1], [], []>} : vector<8x64xf32>, vector<64x32xf32>, vector<8x32xf32> -> vector<8x32xf32>
    %c0_8 = arith.constant 0 : index
    %c0_9 = arith.constant 0 : index
    %8 = vector.load %arg4[%c0_8, %c0_9] : memref<1x32xf32, #tpu.memory_space<vmem>>, vector<1x32xf32>
    %9 = vector.broadcast %8 : vector<1x32xf32> to vector<8x32xf32>
    %10 = arith.addf %7, %9 : vector<8x32xf32>
    %c0_10 = arith.constant 0 : index
    %c0_11 = arith.constant 0 : index
    %11 = vector.load %arg5[%c0_10, %c0_11] : memref<32x128xf32, #tpu.memory_space<vmem>>, vector<32x128xf32>
    %cst_12 = arith.constant dense<0.000000e+00> : vector<8x128xf32>
    %12 = tpu.matmul %10, %11, %cst_12 {dimension_numbers = #tpu.dot_dimension_numbers<[1], [0], [0], [1], [0, 0, 1, 1], [], []>} : vector<8x32xf32>, vector<32x128xf32>, vector<8x128xf32> -> vector<8x128xf32>
    %c0_13 = arith.constant 0 : index
    %c0_14 = arith.constant 0 : index
    %13 = vector.load %arg6[%c0_13, %c0_14] : memref<1x128xf32, #tpu.memory_space<vmem>>, vector<1x128xf32>
    %14 = vector.broadcast %13 : vector<1x128xf32> to vector<8x128xf32>
    %15 = arith.addf %12, %14 : vector<8x128xf32>
    %16 = arith.negf %15 : vector<8x128xf32>
    %17 = math.exp %16 : vector<8x128xf32>
    %cst_15 = arith.constant 1.000000e+00 : f32
    %18 = vector.broadcast %cst_15 : f32 to vector<8x128xf32>
    %19 = arith.addf %18, %17 : vector<8x128xf32>
    %20 = arith.divf %18, %19 : vector<8x128xf32>
    %c0_16 = arith.constant 0 : index
    %c0_17 = arith.constant 0 : index
    %21 = vector.load %arg7[%c0_16, %c0_17] : memref<8x128xf32, #tpu.memory_space<vmem>>, vector<8x128xf32>
    tpu.vector_store %arg7[%c0_16, %c0_17], %20 {strides = array<i32>} : memref<8x128xf32, #tpu.memory_space<vmem>>, vector<8x128xf32>,
    return
  }
}

</mosaic_0001>

<bundles_post_ra>
// kernel: mlp_forward.1
= control target key start
LH: loop header
LB: loop body
LE: loop exit
PB: predicated region body
PF: predicated region fallthrough
CT: control target
= control target key end

     0   :  { %v394_v0 = vmov 0.0|0.0   ;;  %vm395_vm0 = vmmov 0   ;;  %v396_v4 = vmov 0.0   ;;  %vm38_vm1 = vcmask 261120   ;;  %s505_s1 = inlined_call_operand.vmem [shape: f32[32,64], index: 1, kind: input, shape index: {}]   ;;  %s506_s3 = inlined_call_operand.vmem [shape: f32[64,32], index: 3, kind: input, shape index: {}]   ;;  %s507_s0 = inlined_call_operand.vmem [shape: f32[8,32], index: 0, kind: input, shape index: {}]   ;;  %s508_s5 = inlined_call_operand.vmem [shape: f32[32,128], index: 5, kind: input, shape index: {}]   ;;  %s509_s2 = inlined_call_operand.vmem [shape: f32[1,64], index: 2, kind: input, shape index: {}]   ;;  %s510_s4 = inlined_call_operand.vmem [shape: f32[1,32], index: 4, kind: input, shape index: {}]   ;;  %s511_s6 = inlined_call_operand.vmem [shape: f32[1,128], index: 6, kind: input, shape index: {}]   ;;  %s512_s7 = inlined_call_operand.vmem [shape: f32[8,128], index: 7, kind: output, shape index: {}]  }
   0x1   :  { %363 = vmatprep.subr.bf16.mxu0 %v394_v0  ;;  %v27_v1 = vld [vmem:[%s505_s1] sm:$0xff]  ;;  %v28_v2 = vld [vmem:[%s505_s1 + $0x8] sm:$0xff]  ;;  %v29_v3 = vld [vmem:[%s505_s1 + $0x10] sm:$0xff]  ;;  %330 = vmatprep.mubr.msk.f32.mxu0 %vm395_vm0, %v396_v4  ;;  %vm127_vm2 = vcmask 523264  }
   0x2   :  { %v364_v5 = vpack.c.bf16 %v28_v2, %v27_v1  ;;  %v30_v6 = vld [vmem:[%s505_s1 + $0x18] sm:$0xff]  ;;  %369 = vmatprep.subr.bf16.mxu1 %v394_v0  ;;  %v112_v7 = vld [vmem:[%s506_s3] sm:$0xff]  ;;  %349 = vmatprep.mubr.msk.f32.mxu1 %vm395_vm0, %v396_v4  ;;  %v113_v8 = vld [vmem:[%s506_s3 + $0x8] sm:$0xff] }
   0x3   :  { %v114_v9 = vld [vmem:[%s506_s3 + $0x10] sm:$0xff]  ;;  %v115_v10 = vld [vmem:[%s506_s3 + $0x18] sm:$0xff]  ;;  %v367_v11 = vpack.c.bf16 %v30_v6, %v29_v3  ;;  %v370_v12 = vpack.c.bf16 %v113_v8, %v112_v7  ;;  %v116_v14 = vld [vmem:[%s506_s3 + $0x20] sm:$0xff] }
   0x4   :  { %365 = vmatpush3.bf16.msra.mxu0 %v364_v5  ;;  %v373_v13 = vpack.c.bf16 %v115_v10, %v114_v9  ;;  %v117_v15 = vld [vmem:[%s506_s3 + $0x28] sm:$0xff]  ;;  %v26_v16 = vld [vmem:[%s507_s0] sm:$0xff]  ;;  %v118_v18 = vld [vmem:[%s506_s3 + $0x30] sm:$0xff] }
   0x5   :  { %366 = vmatprep.subr.bf16.mxu0 %v394_v0  ;;  %371 = vmatpush3.bf16.msra.mxu1 %v370_v12  ;;  %v376_v17 = vpack.c.bf16 %v117_v15, %v116_v14  ;;  %v119_v19 = vld [vmem:[%s506_s3 + $0x38] sm:$0xff]  ;;  %v201_v21 = vld [vmem:[%s508_s5] sm:$0xff]  ;;  %v202_v22 = vld [vmem:[%s508_s5 + $0x8] sm:$0xff] }
   0x6   :  { %372 = vmatprep.subr.bf16.mxu1 %v394_v0  ;;  %v379_v20 = vpack.c.bf16 %v119_v19, %v118_v18  ;;  %v382_v23 = vpack.c.bf16 %v202_v22, %v201_v21  ;;  %v296_v24 = vld [vmem:[%s509_s2] ss:$0 sm:$0xff]  ;;  %v203_v28 = vld [vmem:[%s508_s5 + $0x10] sm:$0xff]  ;;  %v204_v29 = vld [vmem:[%s508_s5 + $0x18] sm:$0xff] }
   0x7   :  { %v385_v30 = vpack.c.bf16 %v204_v29, %v203_v28  ;;  %v298_v31 = vld [vmem:[%s510_s4] ss:$0 sm:$0xff] }
   0x8   :  { %368 = vmatpush3.bf16.msra.mxu0 %v367_v11  ;;  %v300_v35 = vld [vmem:[%s511_s6] ss:$0 sm:$0xff] }
   0x9   :  { %381 = vmatprep.subr.bf16.mxu0 %v394_v0  ;;  %374 = vmatpush3.bf16.msra.mxu1 %v373_v13 }
   0xa   :  { %375 = vmatprep.subr.bf16.mxu1 %v394_v0 }
   0xb   :  { %331 = vmatmul.mubr.msk.f32.vlgmr.msra.gmra.mrb[0].mxu0 %vm38_vm1, %v26_v16 }
   0xc   :  { %360 = vmatprep.mubr.msk.f32.mxu0 %vm395_vm0, %v396_v4  ;;  %383 = vmatpush3.bf16.msra.mxu0 %v382_v23 }
   0xd   :  { %377 = vmatpush3.bf16.msra.mxu1 %v376_v17  ;;  %384 = vmatprep.subr.bf16.mxu0 %v394_v0 }
   0xe   :  { %378 = vmatprep.subr.bf16.mxu1 %v394_v0 }
  0x10   :  { %386 = vmatpush3.bf16.msra.mxu0 %v385_v30 }
  0x11   :  { %380 = vmatpush3.bf16.msra.mxu1 %v379_v20 }
  0xde   :  { %v108_v25 = vpop.f32.mrb[0].mxu0 }
  0xdf   :  { %v109_v26 = vadd.f32 %v296_v24, %v108_v25  ;;  %v332_v27 = vpop.f32.mrb[1].mxu0 }
  0xe1   :  { %350 = vmatmul.mubr.msk.f32.vlgmr.msra.gmra.mrb[0].mxu1 %vm127_vm2, %v109_v26 }
 0x1b4   :  { %v197_v32 = vpop.f32.mrb[0].mxu1 }
 0x1b5   :  { %v198_v33 = vadd.f32 %v298_v31, %v197_v32  ;;  %v351_v34 = vpop.f32.mrb[1].mxu1 }
 0x1b7   :  { %361 = vmatmul.mubr.msk.f32.vlgmr.msra.gmra.mrb[2].mxu0 %vm38_vm1, %v198_v33 }
 0x28a   :  { %v281_v36 = vpop.f32.mrb[2].mxu0 }
 0x28b   :  { %v282_v37 = vadd.f32 %v300_v35, %v281_v36  ;;  %v362_v38 = vpop.f32.mrb[3].mxu0 }
 0x28d   :  { %v302_v39 = vmul.f32 -1.442695, %v282_v37 }
 0x28f   :  { %390 = vpow2.f32 %v302_v39 }
 0x299   :  { %v391_v40 = vpop.eup %390 }
 0x29a   :  { %v288_v41 = vadd.f32 1.0, %v391_v40 }
 0x29c   :  { %392 = vrcp.f32 %v288_v41 }
 0x2a6   :  { %v393_v42 = vpop.eup %392 }
 0x2a7   :  { %291 = vst [vmem:[%s512_s7] sm:$0xff] %v393_v42 }

</bundles_post_ra>
